<compile_context>
chip_gen: v7x
topology: tpu7x:2x2x1
jax: 0.10.0
libtpu: 0.0.40
codegen_flags: <defaults>
</compile_context>

<pallas_src>
import functools

import jax
import jax.numpy as jnp
from jax.experimental import pallas as pl
from jax.experimental.pallas import tpu as pltpu


# ----------------------------------------------------------------------------
# Parameter collapse (done once, outside the kernels).
# ----------------------------------------------------------------------------
def _prep_coefs(params, n_jobs):
    """Collapse the affine network into per-input coefficients.

    Returns coef of shape (n_machines + 3, 1):
      rows [0:n_machines]   = v_m   (machine_times coefficients)
      row   n_machines      = c_p   (coefficient of sum(proc_times))
      row   n_machines + 1  = c_a   (coefficient of sum(assigned))
      row   n_machines + 2  = c0    (constant term)
    """
    d = params["w_job"].shape[1]
    wj = params["w_job"].astype(jnp.float32)      # (2, d)
    bj = params["b_job"].astype(jnp.float32)      # (d,)
    wm = params["w_mach"].astype(jnp.float32)     # (n_machines, d)
    bm = params["b_mach"].astype(jnp.float32)     # (d,)
    wfc = params["w_fc"].astype(jnp.float32)      # (2d, 1)
    bfc = params["b_fc"].astype(jnp.float32)      # (1,)

    wfc_j = wfc[:d, 0]                            # (d,)
    wfc_m = wfc[d:, 0]                            # (d,)

    c_p = jnp.dot(wj[0], wfc_j) / n_jobs
    c_a = jnp.dot(wj[1], wfc_j) / n_jobs
    v_m = wm @ wfc_m                              # (n_machines,)
    c0 = jnp.dot(bj, wfc_j) + jnp.dot(bm, wfc_m) + bfc[0]

    coef = jnp.concatenate([v_m, jnp.stack([c_p, c_a, c0])]).reshape(-1, 1)
    return coef                                   # (n_machines + 3, 1)


# ----------------------------------------------------------------------------
# Single-instance kernel (grid-less, 3 packed VMEM operands, ~10 flops).
# ----------------------------------------------------------------------------
def _critic_kernel(data_ref, mach_ref, coef_ref, out_ref, *, n_machines):
    # data_ref: (2, n_jobs)  rows = [proc_times, assigned]
    # mach_ref: (n_machines, 1)
    # coef_ref: (n_machines + 3, 1)
    sums = jnp.sum(data_ref[...], axis=1, keepdims=True)             # (2, 1)
    vm = coef_ref[0:n_machines, :]                                   # (nm, 1)
    cpa = coef_ref[n_machines:n_machines + 2, :]                     # (2, 1)
    c0 = coef_ref[n_machines + 2:n_machines + 3, :]                  # (1, 1)
    job_term = jnp.sum(sums * cpa, axis=0, keepdims=True)            # (1, 1)
    mach_term = jnp.sum(mach_ref[...] * vm, axis=0, keepdims=True)   # (1, 1)
    out_ref[...] = job_term + mach_term + c0


def critic_forward(proc_times, assigned, machine_times, params):
    """Pallas implementation of Critic.forward (single instance).

    proc_times, assigned : (n_jobs,)
    machine_times        : (n_machines,)
    Returns a scalar float32 value.
    """
    n_jobs = proc_times.shape[0]
    n_machines = machine_times.shape[0]

    data = jnp.stack([proc_times.astype(jnp.float32),
                      assigned.astype(jnp.float32)], axis=0)         # (2, n_jobs)
    mach = machine_times.astype(jnp.float32).reshape(n_machines, 1)  # (nm, 1)
    coef = _prep_coefs(params, n_jobs)                               # (nm+3, 1)

    vmem = pl.BlockSpec(memory_space=pltpu.MemorySpace.VMEM)
    out = pl.pallas_call(
        functools.partial(_critic_kernel, n_machines=n_machines),
        out_shape=jax.ShapeDtypeStruct((1, 1), jnp.float32),
        in_specs=[vmem, vmem, vmem],
        out_specs=vmem,
    )(data, mach, coef)
    return out[0, 0]  # value.squeeze(-1)


# ----------------------------------------------------------------------------
# Batched kernel: batch on the lane axis (lane-dense loads and stores).
# ----------------------------------------------------------------------------
def _critic_batched_kernel(pt_ref, as_ref, mt_ref, coef_ref, out_ref, *,
                           n_machines):
    # pt_ref, as_ref: (n_jobs, bt)   mt_ref: (n_machines, bt)
    # coef_ref: (n_machines + 3, 1)  out_ref: (1, bt)
    vm = coef_ref[0:n_machines, :]                                   # (nm, 1)
    c_p = coef_ref[n_machines:n_machines + 1, :]                     # (1, 1)
    c_a = coef_ref[n_machines + 1:n_machines + 2, :]                 # (1, 1)
    c0 = coef_ref[n_machines + 2:n_machines + 3, :]                  # (1, 1)

    sp = jnp.sum(pt_ref[...], axis=0, keepdims=True)                 # (1, bt)
    sa = jnp.sum(as_ref[...], axis=0, keepdims=True)                 # (1, bt)
    mm = jnp.sum(mt_ref[...] * vm, axis=0, keepdims=True)            # (1, bt)

    out_ref[...] = c_p * sp + c_a * sa + mm + c0


def critic_forward_batched(proc_times, assigned, machine_times, params, *,
                           max_block_b=1024):
    """Batched Critic.forward.

    proc_times, assigned : (B, n_jobs)
    machine_times        : (B, n_machines)
    Returns (B,) float32 values.
    """
    B, n_jobs = proc_times.shape
    n_machines = machine_times.shape[1]
    coef = _prep_coefs(params, n_jobs)                               # (nm+3, 1)

    # Lane block for the batch axis: multiple of 128, capped at max_block_b.
    bt = min(max_block_b, pl.cdiv(B, 128) * 128)
    # Keep >= 2 grid steps when there is enough batch so v7x's two
    # TensorCores both get work (negligible cost on 1-TC v5e/v6e).
    if B > 128 and pl.cdiv(B, bt) < 2:
        bt = max(128, (bt // 2 // 128) * 128)
    B_pad = pl.cdiv(B, bt) * bt

    def pad_t(x):  # (B, f) -> (f, B_pad), batch on lanes, zero-padded tail
        xt = x.astype(jnp.float32).T
        return jnp.pad(xt, ((0, 0), (0, B_pad - B)))

    pt_t = pad_t(proc_times)        # (n_jobs, B_pad)
    as_t = pad_t(assigned)          # (n_jobs, B_pad)
    mt_t = pad_t(machine_times)     # (n_machines, B_pad)

    out = pl.pallas_call(
        functools.partial(_critic_batched_kernel, n_machines=n_machines),
        out_shape=jax.ShapeDtypeStruct((1, B_pad), jnp.float32),
        grid=(B_pad // bt,),
        in_specs=[
            pl.BlockSpec((n_jobs, bt), lambda b: (0, b)),            # proc^T
            pl.BlockSpec((n_jobs, bt), lambda b: (0, b)),            # assigned^T
            pl.BlockSpec((n_machines, bt), lambda b: (0, b)),        # machines^T
            pl.BlockSpec((n_machines + 3, 1), lambda b: (0, 0)),     # coefs
        ],
        out_specs=pl.BlockSpec((1, bt), lambda b: (0, b)),           # lane-dense
        compiler_params=pltpu.CompilerParams(
            dimension_semantics=("parallel",),
            vmem_limit_bytes=32 * 1024 * 1024),
    )(pt_t, as_t, mt_t, coef)

    return out[0, :B]


# ----------------------------------------------------------------------------
# Reference + init
# ----------------------------------------------------------------------------
def init_params(key, n_machines, d_model=32):
    """Deterministic parameter init (weights stored transposed:
    (in_features, out_features), matching the reference below)."""
    ks = jax.random.split(key, 6)
    scale = 0.1
    return {
        "w_job":  scale * jax.random.normal(ks[0], (2, d_model), jnp.float32),
        "b_job":  scale * jax.random.normal(ks[1], (d_model,), jnp.float32),
        "w_mach": scale * jax.random.normal(ks[2], (n_machines, d_model), jnp.float32),
        "b_mach": scale * jax.random.normal(ks[3], (d_model,), jnp.float32),
        "w_fc":   scale * jax.random.normal(ks[4], (2 * d_model, 1), jnp.float32),
        "b_fc":   scale * jax.random.normal(ks[5], (1,), jnp.float32),
    }


def _ref_forward(proc_times, assigned, machine_times, params):
    """Pure-JAX reference mirroring the PyTorch forward."""
    feat = jnp.stack([proc_times.astype(jnp.float32),
                      assigned.astype(jnp.float32)], axis=1)
    job = feat @ params["w_job"] + params["b_job"]
    job_feat = job.mean(axis=0)
    mach = (machine_times.astype(jnp.float32)[None, :] @ params["w_mach"]
            + params["b_mach"])
    x = jnp.concatenate([job_feat, mach[0]], axis=-1)
    return (x @ params["w_fc"] + params["b_fc"])[0]


if __name__ == "__main__":
    n_jobs, n_machines, d_model = 8, 4, 32

    key = jax.random.PRNGKey(0)
    k_pt, k_as, k_mt, k_params, k_batch = jax.random.split(key, 5)

    proc_times = jax.random.uniform(k_pt, (n_jobs,), jnp.float32, 1.0, 10.0)
    assigned = jax.random.bernoulli(k_as, 0.5, (n_jobs,)).astype(jnp.float32)
    machine_times = jax.random.uniform(k_mt, (n_machines,), jnp.float32, 0.0, 20.0)

    params = init_params(k_params, n_machines, d_model)

    # Single-instance path.
    value = jax.block_until_ready(
        critic_forward(proc_times, assigned, machine_times, params))
    ref = _ref_forward(proc_times, assigned, machine_times, params)
    assert jnp.allclose(value, ref, atol=1e-4, rtol=1e-4), (value, ref)

    # Batched path.
    B = 16
    kb1, kb2, kb3 = jax.random.split(k_batch, 3)
    pt_b = jax.random.uniform(kb1, (B, n_jobs), jnp.float32, 1.0, 10.0)
    as_b = jax.random.bernoulli(kb2, 0.5, (B, n_jobs)).astype(jnp.float32)
    mt_b = jax.random.uniform(kb3, (B, n_machines), jnp.float32, 0.0, 20.0)

    vals = jax.block_until_ready(
        critic_forward_batched(pt_b, as_b, mt_b, params))
    refs = jax.vmap(_ref_forward, in_axes=(0, 0, 0, None))(pt_b, as_b, mt_b, params)
    assert jnp.allclose(vals, refs, atol=1e-4, rtol=1e-4), (vals, refs)

    print("KERNEL_OK")
</pallas_src>

<mosaic_0001>
module attributes {stable_mosaic.version = 11 : i64} {
  func.func @_critic_kernel(%arg0: memref<2x8xf32, #tpu.memory_space<vmem>>, %arg1: memref<4x1xf32, #tpu.memory_space<vmem>>, %arg2: memref<7x1xf32, #tpu.memory_space<vmem>>, %arg3: memref<1x1xf32, #tpu.memory_space<vmem>>) attributes {dimension_semantics = [], scalar_prefetch = 0 : i64, scratch_operands = 0 : i64, tpu.core_type = #tpu.core_type<tc>} {
    %c0 = arith.constant 0 : index
    %c0_0 = arith.constant 0 : index
    %0 = vector.load %arg0[%c0, %c0_0] : memref<2x8xf32, #tpu.memory_space<vmem>>, vector<2x8xf32>
    %cst = arith.constant dense<0.000000e+00> : vector<2xf32>
    %1 = vector.multi_reduction <add>, %0, %cst [1] : vector<2x8xf32> to vector<2xf32>
    %2 = vector.shape_cast %1 : vector<2xf32> to vector<2x1xf32>
    %c0_1 = arith.constant 0 : index
    %c0_2 = arith.constant 0 : index
    %3 = vector.load %arg2[%c0_1, %c0_2] : memref<7x1xf32, #tpu.memory_space<vmem>>, vector<4x1xf32>
    %c4 = arith.constant 4 : index
    %c0_3 = arith.constant 0 : index
    %4 = vector.load %arg2[%c4, %c0_3] : memref<7x1xf32, #tpu.memory_space<vmem>>, vector<2x1xf32>
    %c6 = arith.constant 6 : index
    %c0_4 = arith.constant 0 : index
    %5 = vector.load %arg2[%c6, %c0_4] : memref<7x1xf32, #tpu.memory_space<vmem>>, vector<1x1xf32>
    %6 = arith.mulf %2, %4 : vector<2x1xf32>
    %cst_5 = arith.constant dense<0.000000e+00> : vector<1xf32>
    %7 = vector.multi_reduction <add>, %6, %cst_5 [0] : vector<2x1xf32> to vector<1xf32>
    %8 = vector.shape_cast %7 : vector<1xf32> to vector<1x1xf32>
    %c0_6 = arith.constant 0 : index
    %c0_7 = arith.constant 0 : index
    %9 = vector.load %arg1[%c0_6, %c0_7] : memref<4x1xf32, #tpu.memory_space<vmem>>, vector<4x1xf32>
    %10 = arith.mulf %9, %3 : vector<4x1xf32>
    %cst_8 = arith.constant dense<0.000000e+00> : vector<1xf32>
    %11 = vector.multi_reduction <add>, %10, %cst_8 [0] : vector<4x1xf32> to vector<1xf32>
    %12 = vector.shape_cast %11 : vector<1xf32> to vector<1x1xf32>
    %13 = arith.addf %8, %12 : vector<1x1xf32>
    %14 = arith.addf %13, %5 : vector<1x1xf32>
    %c0_9 = arith.constant 0 : index
    %c0_10 = arith.constant 0 : index
    %15 = vector.load %arg3[%c0_9, %c0_10] : memref<1x1xf32, #tpu.memory_space<vmem>>, vector<1x1xf32>
    tpu.vector_store %arg3[%c0_9, %c0_10], %14 {strides = array<i32>} : memref<1x1xf32, #tpu.memory_space<vmem>>, vector<1x1xf32>,
    return
  }
}

</mosaic_0001>

<bundles_post_ra>
// kernel: tpu_custom_call.1
= control target key start
LH: loop header
LB: loop body
LE: loop exit
PB: predicated region body
PF: predicated region fallthrough
CT: control target
= control target key end

     0   :  { %vm16_vm0 = vcmask 58368   ;;  %s133_s0 = inlined_call_operand.vmem [shape: f32[2,8], index: 0, kind: input, shape index: {}]   ;;  %s134_s1 = inlined_call_operand.vmem [shape: f32[4,1], index: 1, kind: input, shape index: {}]   ;;  %s135_s2 = inlined_call_operand.vmem [shape: f32[7,1], index: 2, kind: input, shape index: {}]   ;;  %s136_s3 = inlined_call_operand.hbm [shape: f32[1,1], index: 3, kind: output, shape index: {}]  }
   0x1   :  { %v15_v0 = vld [vmem:[%s133_s0] sm:$0x3] }
   0x2   :  { %8 = vsyncpa [#allocation3], 0  ;;  %v17_v1 = vsel %vm16_vm0, %v15_v0, 0.0  ;;  %v20_v2 = vld [vmem:[%s135_s2] sm:$0xf]  ;;  %vm34_vm1 = vcmask 3072  }
   0x3   :  { %18 = vadd.xlane.f32.xlu0 %v17_v1  ;;  %v32_v3 = vld [vmem:[%s134_s1] sm:$0xf]  ;;  %v21_v8 = vld [vmem:[%s135_s2 + $0x4] sm:$0x3]  ;;  %vm24_vm2 = vcmask 1024   ;;  %s85_s20 = smov [#allocation2]  }
   0x4   :  { %v33_v4 = vmul.f32 %v32_v3, %v20_v2  ;;  %v22_v22 = vld [vmem:[%s135_s2 + $0x6] sm:$0x1]  ;;  %s52_s21 = sshll.u32 %s85_s20, 4  ;;  %vm44_vm3 = vcmask 0   ;;  %s53_s21 = int_to_ptr.vmem [resolvable:$true] %s52_s21 }
   0x5   :  { %s61_s22 = scalar_lea.vmem %s53_s21, 16  ;;  %s65_s23 = scalar_lea.vmem %s53_s21, 32 }
   0x6   :  { %v35_v5 = vsel %vm34_vm1, %v33_v4, 0.0  ;;  %p62_p0 = scmp.ne.s32.totalorder %s53_s21, %s61_s22  ;;  %p66_p1 = scmp.lt.s32.totalorder %s53_s21, %s53_s21 }
   0x7   :  { %v36_v6 = vrot.slane %v35_v5, 4  ;;  %p67_p2 = scmp.lt.s32.totalorder %s65_s23, %s61_s22 }
   0x9   :  { %v37_v7 = vadd.f32 %v36_v6, %v35_v5  ;;  %p68_p3 = por %p67_p2, %p66_p1 }
   0xb   :  { %v38_v10 = vrot.slane %v37_v7, 2  ;;  %p69_p4 = pnand %p68_p3, %p62_p0 }
   0xd   :  { %v39_v14 = vadd.f32 %v38_v10, %v37_v7 }
   0xf   :  { %v40_v17 = vrot.slane %v39_v14, 1 }
  0x11   :  { %v41_v20 = vadd.f32 %v40_v17, %v39_v14 }
  0x90   :  { %v19_v9 = vpop.xlane.xlu0 %18 }
  0x91   :  { %v23_v11 = vmul.f32 %v21_v8, %v19_v9 }
  0x93   :  { %v25_v12 = vsel %vm24_vm2, %v23_v11, 0.0 }
  0x94   :  { %v26_v13 = vrot.slane %v25_v12, 4 }
  0x96   :  { %v27_v15 = vadd.f32 %v26_v13, %v25_v12 }
  0x98   :  { %v28_v16 = vrot.slane %v27_v15, 2 }
  0x9a   :  { %v29_v18 = vadd.f32 %v28_v16, %v27_v15 }
  0x9c   :  { %v30_v19 = vrot.slane %v29_v18, 1 }
  0x9e   :  { %v31_v21 = vadd.f32 %v30_v19, %v29_v18 }
  0xa0   :  { %v42_v23 = vadd.f32 %v41_v20, %v31_v21 }
  0xa2   :  { %v43_v24 = vadd.f32 %v42_v23, %v22_v22 }
  0xa4   :  { %45 = vst.msk [vmem:[#allocation2] sm:$0x1] %vm44_vm3, %v43_v24 }
  0xa5   :  { %72 = shalt.err (!%p69_p4)
}
  0xa6   :  { %s73_s26 = scalar_lea.hbm %s136_s3, 16 }
  0xa7   :  { %p74_p5 = scmp.ne.s32.totalorder %s136_s3, %s73_s26  ;;  %p77_p6 = scmp.lt.u32.totalorder %s73_s26, %s136_s3 }
  0xa9   :  { %p79_p7 = pnand %p77_p6, %p74_p5 }
  0xab   :  { %82 = shalt.err (!%p79_p7)
}
  0xac   :  { %55 = dma.vmem_to_hbm [thread:$0]  %s53_s21, 16, %s136_s3, [#allocation3]  }
  0xad   :  { %83 = dma.done.wait [#allocation3], 16  }
  0xae   :  { %84 = vsyncadd [#allocation3], 4294967280 }
  0xaf   :  { %59 = vsyncpa [#allocation3], 1 }

</bundles_post_ra>
